<compile_context>
chip_gen: v5e
topology: v5e:2x2
jax: 0.10.0
libtpu: 0.0.40
codegen_flags: <defaults>
</compile_context>

<pallas_src>
import functools

import jax
import jax.numpy as jnp
from jax import lax
from jax.experimental import pallas as pl
from jax.experimental.pallas import tpu as pltpu

_NEG_INIT = -3.0e38               # finite "minus infinity" (avoids inf-inf NaNs)
_VMEM_INPUT_BUDGET = 32 * 1024 * 1024   # 4 streams x 2 buffers of logit tiles
_VMEM_LIMIT_BYTES = 48 * 1024 * 1024    # fits v5e/v6e (128 MiB) and v7x (64 MiB/TC)


def _dpo_lse_kernel(cl_ref, rl_ref, rcl_ref, rrl_ref, lse_ref, m_ref, l_ref,
                    *, v_total, v_tile, chunk):
    """Online log-sum-exp over the vocab axis for 4 logit streams.

    Streams: 0=chosen, 1=rejected, 2=reference_chosen, 3=reference_rejected.
    lse_ref block is (4, tr): lane-dense f32 output (rows on lanes).
    m_ref / l_ref scratch are (4, tr, 1): running max / running sum-exp, kept
    sublane-major so they broadcast for free against the (tr, chunk) logit
    chunks during the reduction.
    """
    j = pl.program_id(1)
    nj = pl.num_programs(1)
    tr = cl_ref.shape[0]

    @pl.when(j == 0)
    def _init():
        m_ref[...] = jnp.full(m_ref.shape, _NEG_INIT, jnp.float32)
        l_ref[...] = jnp.zeros(l_ref.shape, jnp.float32)

    needs_col_mask = (v_total % v_tile) != 0      # static
    n_chunks = v_tile // chunk                    # static

    def update(s, logits_ref):
        m = m_ref[s, :, :]          # (tr, 1)
        l = l_ref[s, :, :]          # (tr, 1)
        # Static python loop over lane chunks: each chunk's f32 temp stays
        # small (tr x chunk) so it is not spilled / recomputed between the max
        # pass and the exp pass; only the (tr, 1) running stats are carried.
        for c in range(n_chunks):
            x = logits_ref[:, c * chunk:(c + 1) * chunk].astype(jnp.float32)
            if needs_col_mask:      # compiled out when v_tile divides v_total
                col = (j * v_tile + c * chunk
                       + lax.broadcasted_iota(jnp.int32, (tr, chunk), 1))
                x = jnp.where(col < v_total, x, _NEG_INIT)
            m_new = jnp.maximum(m, jnp.max(x, axis=-1, keepdims=True))
            l = l * jnp.exp(m - m_new) + jnp.sum(jnp.exp(x - m_new),
                                                 axis=-1, keepdims=True)
            m = m_new
        m_ref[s, :, :] = m
        l_ref[s, :, :] = l

    update(0, cl_ref)
    update(1, rl_ref)
    update(2, rcl_ref)
    update(3, rrl_ref)

    @pl.when(j == nj - 1)
    def _finalize():
        # logsumexp = m + log(l).  Running stats are (tr, 1) sublane-major but
        # the lane-dense (4, tr) output wants them lane-major, so transpose via
        # an identity-masked sublane reduction (iota/where/sum only -> always
        # lowers; ~tr^2 ops once per row tile, negligible vs the tr*V work).
        eye = (lax.broadcasted_iota(jnp.int32, (tr, tr), 0)
               == lax.broadcasted_iota(jnp.int32, (tr, tr), 1))
        for s in range(4):
            lse_col = m_ref[s, :, :] + jnp.log(l_ref[s, :, :])        # (tr, 1)
            lse_row = jnp.sum(jnp.where(eye, lse_col, 0.0),
                              axis=0, keepdims=True)                  # (1, tr)
            lse_ref[pl.ds(s, 1), :] = lse_row


def _pick_tiles(R, V, itemsize, row_tile, vocab_tile):
    # Row tile: multiple of 128 (lane-dense (4, tr) output block) or == R.
    if R % 128 == 0 and R > 128:
        rt = row_tile if (row_tile >= 128 and row_tile % 128 == 0) else 256
        tr = min(rt, R)
        # Megacore (v7x): make sure the "parallel" row axis has >= 2 tiles so
        # both TensorCores get work; cheap on single-TC v5e/v6e too.
        if tr == R:
            half = R // 2
            if half >= 128 and half % 128 == 0:
                tr = half
    else:
        tr = R          # small / odd R: one full-row block (equals full dim)

    # Vocab tile: lane aligned, VMEM-budgeted, preferably a static divisor of V
    # so the per-element column mask disappears.
    max_tv = max(128, _VMEM_INPUT_BUDGET // (8 * tr * itemsize))  # 4 strm x 2 bufs
    tv = min(vocab_tile, V, max_tv)
    if tv < V:
        tv = max(128, (tv // 128) * 128)
        d = tv
        while d >= 128 and V % d != 0:
            d -= 128
        if d >= 128:
            tv = d      # divides V -> masked path compiled out
    else:
        tv = V

    # In-kernel lane-chunk width (keeps the per-chunk f32 temp small).
    if tv % 512 == 0:
        chunk = 512
    elif tv % 256 == 0:
        chunk = 256
    elif tv % 128 == 0:
        chunk = 128
    else:
        chunk = tv
    return tr, tv, chunk


def dpo_loss(chosen_logits, rejected_logits, chosen_labels, rejected_labels,
             chosen_masks=None, rejected_masks=None,
             reference_chosen_logits=None, reference_rejected_logits=None,
             beta=1.0, label_smoothing=0.0, eps=1e-5,
             row_tile=256, vocab_tile=4096):
    # TODO(synk): logits_norm=True branch (per-position std normalization) not implemented (default False).
    # TODO(synk): reference_logits=None path (reference_log_probs = 0) not implemented; both refs required.
    assert reference_chosen_logits is not None and reference_rejected_logits is not None

    B, S, V = chosen_logits.shape
    R = B * S
    itemsize = jnp.dtype(chosen_logits.dtype).itemsize
    tr, tv, chunk = _pick_tiles(R, V, itemsize, row_tile, vocab_tile)

    def flat(x):
        return x.reshape(R, V)   # free row-major collapse; native dtype streams in

    kernel = functools.partial(_dpo_lse_kernel, v_total=V, v_tile=tv, chunk=chunk)
    grid = (pl.cdiv(R, tr), pl.cdiv(V, tv))

    logit_spec = pl.BlockSpec((tr, tv), lambda i, j: (i, j))
    out_spec = pl.BlockSpec((4, tr), lambda i, j: (0, i))   # lane-dense output

    # NOTE: when R % tr != 0, the padded rows of the last row tile compute
    # garbage logsumexps on whatever Pallas stages there; that is fine because
    # the writeback is cropped to (4, R) and all reductions are strictly
    # per-row.  Scratch m/l are fully re-initialized at j == 0 for every row
    # tile, which is what makes the "parallel" row axis safe.
    lse = pl.pallas_call(
        kernel,
        out_shape=jax.ShapeDtypeStruct((4, R), jnp.float32),
        grid_spec=pltpu.PrefetchScalarGridSpec(
            num_scalar_prefetch=0,
            grid=grid,
            in_specs=[logit_spec] * 4,
            out_specs=out_spec,
            scratch_shapes=[pltpu.VMEM((4, tr, 1), jnp.float32)] * 2,
        ),
        compiler_params=pltpu.CompilerParams(
            dimension_semantics=("parallel", "arbitrary"),
            vmem_limit_bytes=_VMEM_LIMIT_BYTES,
        ),
    )(flat(chosen_logits), flat(rejected_logits),
      flat(reference_chosen_logits), flat(reference_rejected_logits))

    lse = lse.reshape(4, B, S)

    # --- label-logit gather hoisted out of the kernel (reads O(B*S) elements
    # per stream instead of ~3 VALU ops per logit element in-kernel) ----------
    def gather_label_logit(logits, labels):
        lab = jnp.where(labels == -100, 0, labels).astype(jnp.int32)
        g = jnp.take_along_axis(logits, lab[..., None], axis=-1)[..., 0]
        return g.astype(jnp.float32)

    chosen_lp = gather_label_logit(chosen_logits, chosen_labels) - lse[0]
    rejected_lp = gather_label_logit(rejected_logits, rejected_labels) - lse[1]
    ref_chosen_lp = jnp.clip(
        gather_label_logit(reference_chosen_logits, chosen_labels) - lse[2], -1e5, 1e5)
    ref_rejected_lp = jnp.clip(
        gather_label_logit(reference_rejected_logits, rejected_labels) - lse[3], -1e5, 1e5)

    cm = jnp.ones((B, S), jnp.float32) if chosen_masks is None else chosen_masks.astype(jnp.float32)
    rm = jnp.ones((B, S), jnp.float32) if rejected_masks is None else rejected_masks.astype(jnp.float32)

    def masked_avg(x, m):
        return (x * m).sum(-1) / (m.sum(-1) + eps)

    diff = (masked_avg(chosen_lp, cm) - masked_avg(rejected_lp, rm)
            - (masked_avg(ref_chosen_lp, cm) - masked_avg(ref_rejected_lp, rm)))
    x = beta * diff
    loss = (-jax.nn.log_sigmoid(x) * (1.0 - label_smoothing)
            - jax.nn.log_sigmoid(-x) * label_smoothing)
    return loss.mean()


def _dpo_loss_ref(cl, rl, clab, rlab, cm, rm, rcl, rrl,
                  beta=1.0, label_smoothing=0.0, eps=1e-5):
    """Pure-JAX reference reproducing the PyTorch semantics."""
    def prep(logits, labels, masks, clamp):
        logits = logits.astype(jnp.float32)
        lp = jax.nn.log_softmax(logits, axis=-1)
        labels = jnp.where(labels == -100, 0, labels)
        g = jnp.take_along_axis(lp, labels[..., None], axis=-1)[..., 0]
        if clamp:
            g = jnp.clip(g, -1e5, 1e5)
        masks = masks.astype(jnp.float32)
        return (g * masks).sum(-1) / (masks.sum(-1) + eps)

    c = prep(cl, clab, cm, False)
    r = prep(rl, rlab, rm, False)
    rc = prep(rcl, clab, cm, True)
    rr = prep(rrl, rlab, rm, True)
    x = beta * (c - r - (rc - rr))
    loss = (-jax.nn.log_sigmoid(x) * (1 - label_smoothing)
            - jax.nn.log_sigmoid(-x) * label_smoothing)
    return loss.mean()


def _make_inputs(key, B, S, V):
    k = jax.random.split(key, 6)
    cl = jax.random.normal(k[0], (B, S, V), jnp.float32)
    rl = jax.random.normal(k[1], (B, S, V), jnp.float32)
    rcl = jax.random.normal(k[2], (B, S, V), jnp.float32)
    rrl = jax.random.normal(k[3], (B, S, V), jnp.float32)
    clab = jax.random.randint(k[4], (B, S), 0, V, jnp.int32)
    rlab = jax.random.randint(k[5], (B, S), 0, V, jnp.int32)
    # sprinkle some -100 ignore labels (replaced by 0 inside, like the torch code)
    clab = clab.at[0, 0].set(-100)
    rlab = rlab.at[-1, 1].set(-100)
    cm = jnp.ones((B, S), jnp.float32).at[0, 0].set(0.0)
    rm = jnp.ones((B, S), jnp.float32).at[-1, 1].set(0.0)
    return cl, rl, clab, rlab, cm, rm, rcl, rrl


def _check(args, tol=5e-5, **kw):
    ref = _dpo_loss_ref(*args, beta=kw.get("beta", 1.0),
                        label_smoothing=kw.get("label_smoothing", 0.0),
                        eps=kw.get("eps", 1e-5))
    out = dpo_loss(*args, **kw)
    out = jax.block_until_ready(out)
    assert jnp.allclose(out, ref, atol=tol, rtol=tol), (out, ref)


if __name__ == "__main__":
    key = jax.random.PRNGKey(0)
    k0, k1, k2 = jax.random.split(key, 3)

    # 1) Tiny shapes, default tiles: single row tile (tr == R), single
    #    full-vocab tile (tv == V), unmasked path.
    args_a = _make_inputs(k0, B=2, S=8, V=160)
    _check(args_a, beta=1.0, label_smoothing=0.0, eps=1e-5)

    # 2) Multi-tile grid with a PARTIAL last vocab tile (160 = 128 + 32, masked
    #    path) and a partial last row tile (R = 384, tr = 256 -> cropped
    #    writeback), plus non-default beta / label_smoothing.
    args_b = _make_inputs(k1, B=3, S=128, V=160)
    _check(args_b, beta=0.5, label_smoothing=0.1, eps=1e-5, vocab_tile=128)

    # 3) Clean-divisor vocab tiling (V = 256 with tv = 128, mask compiled out)
    #    and megacore row split (R = 256 -> tr = 128, two parallel row tiles).
    args_c = _make_inputs(k2, B=2, S=128, V=256)
    _check(args_c, beta=1.0, label_smoothing=0.0, eps=1e-5, vocab_tile=128)

    print("KERNEL_OK")
</pallas_src>

<mosaic_0001>
module attributes {stable_mosaic.version = 11 : i64} {
  func.func @_dpo_lse_kernel(%arg0: i32, %arg1: i32, %arg2: memref<16x160xf32, #tpu.memory_space<vmem>>, %arg3: memref<16x160xf32, #tpu.memory_space<vmem>>, %arg4: memref<16x160xf32, #tpu.memory_space<vmem>>, %arg5: memref<16x160xf32, #tpu.memory_space<vmem>>, %arg6: memref<4x16xf32, #tpu.memory_space<vmem>>, %arg7: memref<4x16x1xf32, #tpu.memory_space<vmem>>, %arg8: memref<4x16x1xf32, #tpu.memory_space<vmem>>) attributes {dimension_semantics = [#tpu.dimension_semantics<parallel>, #tpu.dimension_semantics<arbitrary>], iteration_bounds = array<i64: 1, 1>, scalar_prefetch = 0 : i64, scratch_operands = 2 : i64, tpu.core_type = #tpu.core_type<tc>, window_params = [{transform_indices = @transform_0, window_bounds = array<i64: 16, 160>}, {transform_indices = @transform_1, window_bounds = array<i64: 16, 160>}, {transform_indices = @transform_2, window_bounds = array<i64: 16, 160>}, {transform_indices = @transform_3, window_bounds = array<i64: 16, 160>}, {transform_indices = @transform_4, window_bounds = array<i64: 4, 16>}]} {
    %c0_i32 = arith.constant 0 : i32
    %0 = arith.cmpi eq, %arg1, %c0_i32 : i32
    %1 = arith.extui %0 : i1 to i32
    %c0_i32_0 = arith.constant 0 : i32
    %2 = arith.cmpi ne, %1, %c0_i32_0 : i32
    scf.if %2 {
      %cst_62 = arith.constant -3.000000e+38 : f32
      %98 = vector.broadcast %cst_62 : f32 to vector<4x16x1xf32>
      %c0_63 = arith.constant 0 : index
      %c0_64 = arith.constant 0 : index
      %c0_65 = arith.constant 0 : index
      %99 = vector.load %arg7[%c0_63, %c0_64, %c0_65] : memref<4x16x1xf32, #tpu.memory_space<vmem>>, vector<4x16x1xf32>
      tpu.vector_store %arg7[%c0_63, %c0_64, %c0_65], %98 {strides = array<i32>} : memref<4x16x1xf32, #tpu.memory_space<vmem>>, vector<4x16x1xf32>,
      %cst_66 = arith.constant 0.000000e+00 : f32
      %100 = vector.broadcast %cst_66 : f32 to vector<4x16x1xf32>
      %c0_67 = arith.constant 0 : index
      %c0_68 = arith.constant 0 : index
      %c0_69 = arith.constant 0 : index
      %101 = vector.load %arg8[%c0_67, %c0_68, %c0_69] : memref<4x16x1xf32, #tpu.memory_space<vmem>>, vector<4x16x1xf32>
      tpu.vector_store %arg8[%c0_67, %c0_68, %c0_69], %100 {strides = array<i32>} : memref<4x16x1xf32, #tpu.memory_space<vmem>>, vector<4x16x1xf32>,
    } else {
    }
    %c0 = arith.constant 0 : index
    %c0_1 = arith.constant 0 : index
    %c0_2 = arith.constant 0 : index
    %3 = vector.load %arg7[%c0, %c0_1, %c0_2] : memref<4x16x1xf32, #tpu.memory_space<vmem>>, vector<1x16x1xf32>
    %4 = vector.shape_cast %3 : vector<1x16x1xf32> to vector<16x1xf32>
    %c0_3 = arith.constant 0 : index
    %c0_4 = arith.constant 0 : index
    %c0_5 = arith.constant 0 : index
    %5 = vector.load %arg8[%c0_3, %c0_4, %c0_5] : memref<4x16x1xf32, #tpu.memory_space<vmem>>, vector<1x16x1xf32>
    %6 = vector.shape_cast %5 : vector<1x16x1xf32> to vector<16x1xf32>
    %c0_6 = arith.constant 0 : index
    %c0_7 = arith.constant 0 : index
    %7 = vector.load %arg2[%c0_6, %c0_7] : memref<16x160xf32, #tpu.memory_space<vmem>>, vector<16x160xf32>
    %cst = arith.constant dense<0xFF800000> : vector<16xf32>
    %8 = vector.multi_reduction <maximumf>, %7, %cst [1] : vector<16x160xf32> to vector<16xf32>
    %9 = vector.shape_cast %8 : vector<16xf32> to vector<16x1xf32>
    %10 = arith.maximumf %4, %9 : vector<16x1xf32>
    %11 = arith.subf %4, %10 : vector<16x1xf32>
    %12 = math.exp %11 : vector<16x1xf32>
    %13 = arith.mulf %6, %12 : vector<16x1xf32>
    %14 = vector.broadcast %10 : vector<16x1xf32> to vector<16x160xf32>
    %15 = arith.subf %7, %14 : vector<16x160xf32>
    %16 = math.exp %15 : vector<16x160xf32>
    %cst_8 = arith.constant dense<0.000000e+00> : vector<16xf32>
    %17 = vector.multi_reduction <add>, %16, %cst_8 [1] : vector<16x160xf32> to vector<16xf32>
    %18 = vector.shape_cast %17 : vector<16xf32> to vector<16x1xf32>
    %19 = arith.addf %13, %18 : vector<16x1xf32>
    %c0_9 = arith.constant 0 : index
    %c0_10 = arith.constant 0 : index
    %c0_11 = arith.constant 0 : index
    %20 = vector.load %arg7[%c0_9, %c0_10, %c0_11] : memref<4x16x1xf32, #tpu.memory_space<vmem>>, vector<1x16x1xf32>
    %21 = vector.shape_cast %20 : vector<1x16x1xf32> to vector<16x1xf32>
    %22 = vector.shape_cast %10 : vector<16x1xf32> to vector<1x16x1xf32>
    tpu.vector_store %arg7[%c0_9, %c0_10, %c0_11], %22 {strides = array<i32>} : memref<4x16x1xf32, #tpu.memory_space<vmem>>, vector<1x16x1xf32>,
    %c0_12 = arith.constant 0 : index
    %c0_13 = arith.constant 0 : index
    %c0_14 = arith.constant 0 : index
    %23 = vector.load %arg8[%c0_12, %c0_13, %c0_14] : memref<4x16x1xf32, #tpu.memory_space<vmem>>, vector<1x16x1xf32>
    %24 = vector.shape_cast %23 : vector<1x16x1xf32> to vector<16x1xf32>
    %25 = vector.shape_cast %19 : vector<16x1xf32> to vector<1x16x1xf32>
    tpu.vector_store %arg8[%c0_12, %c0_13, %c0_14], %25 {strides = array<i32>} : memref<4x16x1xf32, #tpu.memory_space<vmem>>, vector<1x16x1xf32>,
    %c1 = arith.constant 1 : index
    %c0_15 = arith.constant 0 : index
    %c0_16 = arith.constant 0 : index
    %26 = vector.load %arg7[%c1, %c0_15, %c0_16] : memref<4x16x1xf32, #tpu.memory_space<vmem>>, vector<1x16x1xf32>
    %27 = vector.shape_cast %26 : vector<1x16x1xf32> to vector<16x1xf32>
    %c1_17 = arith.constant 1 : index
    %c0_18 = arith.constant 0 : index
    %c0_19 = arith.constant 0 : index
    %28 = vector.load %arg8[%c1_17, %c0_18, %c0_19] : memref<4x16x1xf32, #tpu.memory_space<vmem>>, vector<1x16x1xf32>
    %29 = vector.shape_cast %28 : vector<1x16x1xf32> to vector<16x1xf32>
    %c0_20 = arith.constant 0 : index
    %c0_21 = arith.constant 0 : index
    %30 = vector.load %arg3[%c0_20, %c0_21] : memref<16x160xf32, #tpu.memory_space<vmem>>, vector<16x160xf32>
    %cst_22 = arith.constant dense<0xFF800000> : vector<16xf32>
    %31 = vector.multi_reduction <maximumf>, %30, %cst_22 [1] : vector<16x160xf32> to vector<16xf32>
    %32 = vector.shape_cast %31 : vector<16xf32> to vector<16x1xf32>
    %33 = arith.maximumf %27, %32 : vector<16x1xf32>
    %34 = arith.subf %27, %33 : vector<16x1xf32>
    %35 = math.exp %34 : vector<16x1xf32>
    %36 = arith.mulf %29, %35 : vector<16x1xf32>
    %37 = vector.broadcast %33 : vector<16x1xf32> to vector<16x160xf32>
    %38 = arith.subf %30, %37 : vector<16x160xf32>
    %39 = math.exp %38 : vector<16x160xf32>
    %cst_23 = arith.constant dense<0.000000e+00> : vector<16xf32>
    %40 = vector.multi_reduction <add>, %39, %cst_23 [1] : vector<16x160xf32> to vector<16xf32>
    %41 = vector.shape_cast %40 : vector<16xf32> to vector<16x1xf32>
    %42 = arith.addf %36, %41 : vector<16x1xf32>
    %c1_24 = arith.constant 1 : index
    %c0_25 = arith.constant 0 : index
    %c0_26 = arith.constant 0 : index
    %43 = vector.load %arg7[%c1_24, %c0_25, %c0_26] : memref<4x16x1xf32, #tpu.memory_space<vmem>>, vector<1x16x1xf32>
    %44 = vector.shape_cast %43 : vector<1x16x1xf32> to vector<16x1xf32>
    %45 = vector.shape_cast %33 : vector<16x1xf32> to vector<1x16x1xf32>
    tpu.vector_store %arg7[%c1_24, %c0_25, %c0_26], %45 {strides = array<i32>} : memref<4x16x1xf32, #tpu.memory_space<vmem>>, vector<1x16x1xf32>,
    %c1_27 = arith.constant 1 : index
    %c0_28 = arith.constant 0 : index
    %c0_29 = arith.constant 0 : index
    %46 = vector.load %arg8[%c1_27, %c0_28, %c0_29] : memref<4x16x1xf32, #tpu.memory_space<vmem>>, vector<1x16x1xf32>
    %47 = vector.shape_cast %46 : vector<1x16x1xf32> to vector<16x1xf32>
    %48 = vector.shape_cast %42 : vector<16x1xf32> to vector<1x16x1xf32>
    tpu.vector_store %arg8[%c1_27, %c0_28, %c0_29], %48 {strides = array<i32>} : memref<4x16x1xf32, #tpu.memory_space<vmem>>, vector<1x16x1xf32>,
    %c2 = arith.constant 2 : index
    %c0_30 = arith.constant 0 : index
    %c0_31 = arith.constant 0 : index
    %49 = vector.load %arg7[%c2, %c0_30, %c0_31] : memref<4x16x1xf32, #tpu.memory_space<vmem>>, vector<1x16x1xf32>
    %50 = vector.shape_cast %49 : vector<1x16x1xf32> to vector<16x1xf32>
    %c2_32 = arith.constant 2 : index
    %c0_33 = arith.constant 0 : index
    %c0_34 = arith.constant 0 : index
    %51 = vector.load %arg8[%c2_32, %c0_33, %c0_34] : memref<4x16x1xf32, #tpu.memory_space<vmem>>, vector<1x16x1xf32>
    %52 = vector.shape_cast %51 : vector<1x16x1xf32> to vector<16x1xf32>
    %c0_35 = arith.constant 0 : index
    %c0_36 = arith.constant 0 : index
    %53 = vector.load %arg4[%c0_35, %c0_36] : memref<16x160xf32, #tpu.memory_space<vmem>>, vector<16x160xf32>
    %cst_37 = arith.constant dense<0xFF800000> : vector<16xf32>
    %54 = vector.multi_reduction <maximumf>, %53, %cst_37 [1] : vector<16x160xf32> to vector<16xf32>
    %55 = vector.shape_cast %54 : vector<16xf32> to vector<16x1xf32>
    %56 = arith.maximumf %50, %55 : vector<16x1xf32>
    %57 = arith.subf %50, %56 : vector<16x1xf32>
    %58 = math.exp %57 : vector<16x1xf32>
    %59 = arith.mulf %52, %58 : vector<16x1xf32>
    %60 = vector.broadcast %56 : vector<16x1xf32> to vector<16x160xf32>
    %61 = arith.subf %53, %60 : vector<16x160xf32>
    %62 = math.exp %61 : vector<16x160xf32>
    %cst_38 = arith.constant dense<0.000000e+00> : vector<16xf32>
    %63 = vector.multi_reduction <add>, %62, %cst_38 [1] : vector<16x160xf32> to vector<16xf32>
    %64 = vector.shape_cast %63 : vector<16xf32> to vector<16x1xf32>
    %65 = arith.addf %59, %64 : vector<16x1xf32>
    %c2_39 = arith.constant 2 : index
    %c0_40 = arith.constant 0 : index
    %c0_41 = arith.constant 0 : index
    %66 = vector.load %arg7[%c2_39, %c0_40, %c0_41] : memref<4x16x1xf32, #tpu.memory_space<vmem>>, vector<1x16x1xf32>
    %67 = vector.shape_cast %66 : vector<1x16x1xf32> to vector<16x1xf32>
    %68 = vector.shape_cast %56 : vector<16x1xf32> to vector<1x16x1xf32>
    tpu.vector_store %arg7[%c2_39, %c0_40, %c0_41], %68 {strides = array<i32>} : memref<4x16x1xf32, #tpu.memory_space<vmem>>, vector<1x16x1xf32>,
    %c2_42 = arith.constant 2 : index
    %c0_43 = arith.constant 0 : index
    %c0_44 = arith.constant 0 : index
    %69 = vector.load %arg8[%c2_42, %c0_43, %c0_44] : memref<4x16x1xf32, #tpu.memory_space<vmem>>, vector<1x16x1xf32>
    %70 = vector.shape_cast %69 : vector<1x16x1xf32> to vector<16x1xf32>
    %71 = vector.shape_cast %65 : vector<16x1xf32> to vector<1x16x1xf32>
    tpu.vector_store %arg8[%c2_42, %c0_43, %c0_44], %71 {strides = array<i32>} : memref<4x16x1xf32, #tpu.memory_space<vmem>>, vector<1x16x1xf32>,
    %c3 = arith.constant 3 : index
    %c0_45 = arith.constant 0 : index
    %c0_46 = arith.constant 0 : index
    %72 = vector.load %arg7[%c3, %c0_45, %c0_46] : memref<4x16x1xf32, #tpu.memory_space<vmem>>, vector<1x16x1xf32>
    %73 = vector.shape_cast %72 : vector<1x16x1xf32> to vector<16x1xf32>
    %c3_47 = arith.constant 3 : index
    %c0_48 = arith.constant 0 : index
    %c0_49 = arith.constant 0 : index
    %74 = vector.load %arg8[%c3_47, %c0_48, %c0_49] : memref<4x16x1xf32, #tpu.memory_space<vmem>>, vector<1x16x1xf32>
    %75 = vector.shape_cast %74 : vector<1x16x1xf32> to vector<16x1xf32>
    %c0_50 = arith.constant 0 : index
    %c0_51 = arith.constant 0 : index
    %76 = vector.load %arg5[%c0_50, %c0_51] : memref<16x160xf32, #tpu.memory_space<vmem>>, vector<16x160xf32>
    %cst_52 = arith.constant dense<0xFF800000> : vector<16xf32>
    %77 = vector.multi_reduction <maximumf>, %76, %cst_52 [1] : vector<16x160xf32> to vector<16xf32>
    %78 = vector.shape_cast %77 : vector<16xf32> to vector<16x1xf32>
    %79 = arith.maximumf %73, %78 : vector<16x1xf32>
    %80 = arith.subf %73, %79 : vector<16x1xf32>
    %81 = math.exp %80 : vector<16x1xf32>
    %82 = arith.mulf %75, %81 : vector<16x1xf32>
    %83 = vector.broadcast %79 : vector<16x1xf32> to vector<16x160xf32>
    %84 = arith.subf %76, %83 : vector<16x160xf32>
    %85 = math.exp %84 : vector<16x160xf32>
    %cst_53 = arith.constant dense<0.000000e+00> : vector<16xf32>
    %86 = vector.multi_reduction <add>, %85, %cst_53 [1] : vector<16x160xf32> to vector<16xf32>
    %87 = vector.shape_cast %86 : vector<16xf32> to vector<16x1xf32>
    %88 = arith.addf %82, %87 : vector<16x1xf32>
    %c3_54 = arith.constant 3 : index
    %c0_55 = arith.constant 0 : index
    %c0_56 = arith.constant 0 : index
    %89 = vector.load %arg7[%c3_54, %c0_55, %c0_56] : memref<4x16x1xf32, #tpu.memory_space<vmem>>, vector<1x16x1xf32>
    %90 = vector.shape_cast %89 : vector<1x16x1xf32> to vector<16x1xf32>
    %91 = vector.shape_cast %79 : vector<16x1xf32> to vector<1x16x1xf32>
    tpu.vector_store %arg7[%c3_54, %c0_55, %c0_56], %91 {strides = array<i32>} : memref<4x16x1xf32, #tpu.memory_space<vmem>>, vector<1x16x1xf32>,
    %c3_57 = arith.constant 3 : index
    %c0_58 = arith.constant 0 : index
    %c0_59 = arith.constant 0 : index
    %92 = vector.load %arg8[%c3_57, %c0_58, %c0_59] : memref<4x16x1xf32, #tpu.memory_space<vmem>>, vector<1x16x1xf32>
    %93 = vector.shape_cast %92 : vector<1x16x1xf32> to vector<16x1xf32>
    %94 = vector.shape_cast %88 : vector<16x1xf32> to vector<1x16x1xf32>
    tpu.vector_store %arg8[%c3_57, %c0_58, %c0_59], %94 {strides = array<i32>} : memref<4x16x1xf32, #tpu.memory_space<vmem>>, vector<1x16x1xf32>,
    %c0_i32_60 = arith.constant 0 : i32
    %95 = arith.cmpi eq, %arg1, %c0_i32_60 : i32
    %96 = arith.extui %95 : i1 to i32
    %c0_i32_61 = arith.constant 0 : i32
    %97 = arith.cmpi ne, %96, %c0_i32_61 : i32
    scf.if %97 {
      %98 = tpu.iota {dimensions = array<i32: 0>} : vector<16x16xi32>
      %99 = tpu.iota {dimensions = array<i32: 1>} : vector<16x16xi32>
      %100 = arith.cmpi eq, %98, %99 : vector<16x16xi32>
      %c0_62 = arith.constant 0 : index
      %c0_63 = arith.constant 0 : index
      %c0_64 = arith.constant 0 : index
      %101 = vector.load %arg7[%c0_62, %c0_63, %c0_64] : memref<4x16x1xf32, #tpu.memory_space<vmem>>, vector<1x16x1xf32>
      %102 = vector.shape_cast %101 : vector<1x16x1xf32> to vector<16x1xf32>
      %c0_65 = arith.constant 0 : index
      %c0_66 = arith.constant 0 : index
      %c0_67 = arith.constant 0 : index
      %103 = vector.load %arg8[%c0_65, %c0_66, %c0_67] : memref<4x16x1xf32, #tpu.memory_space<vmem>>, vector<1x16x1xf32>
      %104 = vector.shape_cast %103 : vector<1x16x1xf32> to vector<16x1xf32>
      %105 = math.log %104 : vector<16x1xf32>
      %106 = arith.addf %102, %105 : vector<16x1xf32>
      %cst_68 = arith.constant 0.000000e+00 : f32
      %107 = vector.shape_cast %106 : vector<16x1xf32> to vector<16x1xf32>
      %108 = vector.broadcast %107 : vector<16x1xf32> to vector<16x16xf32>
      %109 = vector.broadcast %cst_68 : f32 to vector<16x16xf32>
      %110 = arith.select %100, %108, %109 : vector<16x16xi1>, vector<16x16xf32>
      %cst_69 = arith.constant dense<0.000000e+00> : vector<16xf32>
      %111 = vector.multi_reduction <add>, %110, %cst_69 [0] : vector<16x16xf32> to vector<16xf32>
      %112 = vector.shape_cast %111 : vector<16xf32> to vector<1x16xf32>
      %c0_70 = arith.constant 0 : index
      %c0_71 = arith.constant 0 : index
      %113 = vector.load %arg6[%c0_70, %c0_71] : memref<4x16xf32, #tpu.memory_space<vmem>>, vector<1x16xf32>
      tpu.vector_store %arg6[%c0_70, %c0_71], %112 {strides = array<i32>} : memref<4x16xf32, #tpu.memory_space<vmem>>, vector<1x16xf32>,
      %c1_72 = arith.constant 1 : index
      %c0_73 = arith.constant 0 : index
      %c0_74 = arith.constant 0 : index
      %114 = vector.load %arg7[%c1_72, %c0_73, %c0_74] : memref<4x16x1xf32, #tpu.memory_space<vmem>>, vector<1x16x1xf32>
      %115 = vector.shape_cast %114 : vector<1x16x1xf32> to vector<16x1xf32>
      %c1_75 = arith.constant 1 : index
      %c0_76 = arith.constant 0 : index
      %c0_77 = arith.constant 0 : index
      %116 = vector.load %arg8[%c1_75, %c0_76, %c0_77] : memref<4x16x1xf32, #tpu.memory_space<vmem>>, vector<1x16x1xf32>
      %117 = vector.shape_cast %116 : vector<1x16x1xf32> to vector<16x1xf32>
      %118 = math.log %117 : vector<16x1xf32>
      %119 = arith.addf %115, %118 : vector<16x1xf32>
      %cst_78 = arith.constant 0.000000e+00 : f32
      %120 = vector.shape_cast %119 : vector<16x1xf32> to vector<16x1xf32>
      %121 = vector.broadcast %120 : vector<16x1xf32> to vector<16x16xf32>
      %122 = vector.broadcast %cst_78 : f32 to vector<16x16xf32>
      %123 = arith.select %100, %121, %122 : vector<16x16xi1>, vector<16x16xf32>
      %cst_79 = arith.constant dense<0.000000e+00> : vector<16xf32>
      %124 = vector.multi_reduction <add>, %123, %cst_79 [0] : vector<16x16xf32> to vector<16xf32>
      %125 = vector.shape_cast %124 : vector<16xf32> to vector<1x16xf32>
      %c1_80 = arith.constant 1 : index
      %c0_81 = arith.constant 0 : index
      %126 = vector.load %arg6[%c1_80, %c0_81] : memref<4x16xf32, #tpu.memory_space<vmem>>, vector<1x16xf32>
      tpu.vector_store %arg6[%c1_80, %c0_81], %125 {strides = array<i32>} : memref<4x16xf32, #tpu.memory_space<vmem>>, vector<1x16xf32>,
      %c2_82 = arith.constant 2 : index
      %c0_83 = arith.constant 0 : index
      %c0_84 = arith.constant 0 : index
      %127 = vector.load %arg7[%c2_82, %c0_83, %c0_84] : memref<4x16x1xf32, #tpu.memory_space<vmem>>, vector<1x16x1xf32>
      %128 = vector.shape_cast %127 : vector<1x16x1xf32> to vector<16x1xf32>
      %c2_85 = arith.constant 2 : index
      %c0_86 = arith.constant 0 : index
      %c0_87 = arith.constant 0 : index
      %129 = vector.load %arg8[%c2_85, %c0_86, %c0_87] : memref<4x16x1xf32, #tpu.memory_space<vmem>>, vector<1x16x1xf32>
      %130 = vector.shape_cast %129 : vector<1x16x1xf32> to vector<16x1xf32>
      %131 = math.log %130 : vector<16x1xf32>
      %132 = arith.addf %128, %131 : vector<16x1xf32>
      %cst_88 = arith.constant 0.000000e+00 : f32
      %133 = vector.shape_cast %132 : vector<16x1xf32> to vector<16x1xf32>
      %134 = vector.broadcast %133 : vector<16x1xf32> to vector<16x16xf32>
      %135 = vector.broadcast %cst_88 : f32 to vector<16x16xf32>
      %136 = arith.select %100, %134, %135 : vector<16x16xi1>, vector<16x16xf32>
      %cst_89 = arith.constant dense<0.000000e+00> : vector<16xf32>
      %137 = vector.multi_reduction <add>, %136, %cst_89 [0] : vector<16x16xf32> to vector<16xf32>
      %138 = vector.shape_cast %137 : vector<16xf32> to vector<1x16xf32>
      %c2_90 = arith.constant 2 : index
      %c0_91 = arith.constant 0 : index
      %139 = vector.load %arg6[%c2_90, %c0_91] : memref<4x16xf32, #tpu.memory_space<vmem>>, vector<1x16xf32>
      tpu.vector_store %arg6[%c2_90, %c0_91], %138 {strides = array<i32>} : memref<4x16xf32, #tpu.memory_space<vmem>>, vector<1x16xf32>,
      %c3_92 = arith.constant 3 : index
      %c0_93 = arith.constant 0 : index
      %c0_94 = arith.constant 0 : index
      %140 = vector.load %arg7[%c3_92, %c0_93, %c0_94] : memref<4x16x1xf32, #tpu.memory_space<vmem>>, vector<1x16x1xf32>
      %141 = vector.shape_cast %140 : vector<1x16x1xf32> to vector<16x1xf32>
      %c3_95 = arith.constant 3 : index
      %c0_96 = arith.constant 0 : index
      %c0_97 = arith.constant 0 : index
      %142 = vector.load %arg8[%c3_95, %c0_96, %c0_97] : memref<4x16x1xf32, #tpu.memory_space<vmem>>, vector<1x16x1xf32>
      %143 = vector.shape_cast %142 : vector<1x16x1xf32> to vector<16x1xf32>
      %144 = math.log %143 : vector<16x1xf32>
      %145 = arith.addf %141, %144 : vector<16x1xf32>
      %cst_98 = arith.constant 0.000000e+00 : f32
      %146 = vector.shape_cast %145 : vector<16x1xf32> to vector<16x1xf32>
      %147 = vector.broadcast %146 : vector<16x1xf32> to vector<16x16xf32>
      %148 = vector.broadcast %cst_98 : f32 to vector<16x16xf32>
      %149 = arith.select %100, %147, %148 : vector<16x16xi1>, vector<16x16xf32>
      %cst_99 = arith.constant dense<0.000000e+00> : vector<16xf32>
      %150 = vector.multi_reduction <add>, %149, %cst_99 [0] : vector<16x16xf32> to vector<16xf32>
      %151 = vector.shape_cast %150 : vector<16xf32> to vector<1x16xf32>
      %c3_100 = arith.constant 3 : index
      %c0_101 = arith.constant 0 : index
      %152 = vector.load %arg6[%c3_100, %c0_101] : memref<4x16xf32, #tpu.memory_space<vmem>>, vector<1x16xf32>
      tpu.vector_store %arg6[%c3_100, %c0_101], %151 {strides = array<i32>} : memref<4x16xf32, #tpu.memory_space<vmem>>, vector<1x16xf32>,
    } else {
    }
    return
  }
  func.func @transform_0(%arg0: i32, %arg1: i32) -> (i32, i32) {
    %c0_i32 = arith.constant 0 : i32
    return %arg0, %arg1 : i32, i32
  }
  func.func @transform_1(%arg0: i32, %arg1: i32) -> (i32, i32) {
    %c0_i32 = arith.constant 0 : i32
    return %arg0, %arg1 : i32, i32
  }
  func.func @transform_2(%arg0: i32, %arg1: i32) -> (i32, i32) {
    %c0_i32 = arith.constant 0 : i32
    return %arg0, %arg1 : i32, i32
  }
  func.func @transform_3(%arg0: i32, %arg1: i32) -> (i32, i32) {
    %c0_i32 = arith.constant 0 : i32
    return %arg0, %arg1 : i32, i32
  }
  func.func @transform_4(%arg0: i32, %arg1: i32) -> (i32, i32) {
    %c0_i32 = arith.constant 0 : i32
    %c0_i32_0 = arith.constant 0 : i32
    return %c0_i32, %arg0 : i32, i32
  }
}

</mosaic_0001>

<bundles_post_ra>
// kernel: tpu_custom_call.1
= control target key start
LH: loop header
LB: loop body
LE: loop exit
PB: predicated region body
PF: predicated region fallthrough
CT: control target
= control target key end

     0   :  { %9 = vsyncpa [#allocation5], 0  ;;  %s1000_s0 = inlined_call_operand.hbm [shape: f32[16,160], index: 0, kind: input, shape index: {}]   ;;  %s1001_s1 = inlined_call_operand.hbm [shape: f32[16,160], index: 1, kind: input, shape index: {}]   ;;  %s1002_s2 = inlined_call_operand.hbm [shape: f32[16,160], index: 2, kind: input, shape index: {}]   ;;  %s1003_s3 = inlined_call_operand.hbm [shape: f32[16,160], index: 3, kind: input, shape index: {}]   ;;  %s1004_s4 = inlined_call_operand.hbm [shape: f32[4,16], index: 4, kind: output, shape index: {}]  }
   0x1   :  { %10 = vsyncpa [#allocation8], 0 }
   0x2   :  { %11 = vsyncpa [#allocation11], 0 }
   0x3   :  { %12 = vsyncpa [#allocation6], 0  ;;  %s30_s17 = sshll.u32 %s1001_s1, 4  ;;  %s722_s18 = smov [#allocation7]   ;;  %s31_s17 = int_to_ptr.hbm [resolvable:$true] %s30_s17 }
   0x4   :  { %s32_s19 = sshll.u32 %s722_s18, 4  ;;  %s17_s22 = sshll.u32 %s1000_s0, 4  ;;  %s33_s19 = int_to_ptr.vmem [resolvable:$true] %s32_s19  ;;  %s18_s22 = int_to_ptr.hbm [resolvable:$true] %s17_s22 }
   0x5   :  { %s723_s23 = smov 256   ;;  %s724_s24 = smov 16  }
   0x6   :  { %38 = dma.hbm_to_vmem [thread:$0]  %s31_s17, 512, %s33_s19, [#allocation8], %s723_s23, %s723_s23, %s724_s24  }
   0x7   :  { %s725_s25 = smov [#allocation4]   ;;  %s43_s29 = sshll.u32 %s1002_s2, 4  ;;  %s44_s29 = int_to_ptr.hbm [resolvable:$true] %s43_s29 }
   0x8   :  { %s19_s26 = sshll.u32 %s725_s25, 4  ;;  %s56_s5 = sshll.u32 %s1003_s3, 4  ;;  %s20_s26 = int_to_ptr.vmem [resolvable:$true] %s19_s26  ;;  %s57_s5 = int_to_ptr.hbm [resolvable:$true] %s56_s5 }
   0x9   :  { %25 = dma.hbm_to_vmem [thread:$0]  %s18_s22, 512, %s20_s26, [#allocation5], %s723_s23, %s723_s23, %s724_s24  }
   0xa   :  { %s726_s6 = smov [#allocation9]   ;;  %s727_s0 = smov [#allocation10]  }
   0xb   :  { %s45_s7 = sshll.u32 %s726_s6, 4  ;;  %s58_s8 = sshll.u32 %s727_s0, 4  ;;  %s46_s7 = int_to_ptr.vmem [resolvable:$true] %s45_s7  ;;  %s59_s8 = int_to_ptr.vmem [resolvable:$true] %s58_s8 }
   0xc   :  { %51 = dma.hbm_to_vmem [thread:$0]  %s44_s29, 512, %s46_s7, [#allocation8], %s723_s23, %s723_s23, %s724_s24  }
   0xd   :  { %64 = dma.hbm_to_vmem [thread:$0]  %s57_s5, 512, %s59_s8, [#allocation11], %s723_s23, %s723_s23, %s724_s24  }
   0xe   :  { %714 = dma.done.wait [#allocation5], 512  }
   0xf   :  { %715 = vsyncadd [#allocation5], 4294966784 }
  0x10   :  { %716 = dma.done.wait [#allocation8], 1024  }
  0x11   :  { %717 = vsyncadd [#allocation8], 4294966272 }
  0x12   :  { %718 = dma.done.wait [#allocation11], 512  }
  0x13   :  { %719 = vsyncadd [#allocation11], 4294966784  ;;  %vm85_vm0 = vcmask 7168   ;;  %vm110_vm1 = vcmask 261120   ;;  %v728_v0 = vmov -3e+38  }
  0x14   :  { %89 = vst.msk [vmem:[#allocation2 + $0x18] sm:$0xff] %vm85_vm0, %v728_v0  ;;  %v771_v1 = vld [vmem:[#allocation7 + $0x10] sm:$0xff]  ;;  %v773_v2 = vld [vmem:[#allocation7 + $0x18] sm:$0xff]  ;;  %v775_v3 = vld [vmem:[#allocation7] sm:$0xff]  ;;  %v729_v33 = vmov 0   ;;  %v730_v34 = vmov 0.0  }
  0x15   :  { %86 = vst.msk [vmem:[#allocation2] sm:$0xff] %vm85_vm0, %v728_v0  ;;  %v180_v4 = vsel %vm110_vm1, %v773_v2, -inf  ;;  %v780_v5 = vld [vmem:[#allocation7 + $0x8] sm:$0xff]  ;;  %v782_v6 = vld [vmem:[#allocation4] sm:$0xff]  ;;  %v797_v14 = vld [vmem:[#allocation4 + $0x18] sm:$0xff]  ;;  %529 = vset.pattern.permute.xlu0 %v729_v33  ;;  %527 = vset.pattern.permute.xlu1 %v729_v33  ;;  %vm390_vm4 = vcmask 130048  }
  0x16   :  { %87 = vst.msk [vmem:[#allocation2 + $0x8] sm:$0xff] %vm85_vm0, %v728_v0  ;;  %v784_v7 = vld [vmem:[#allocation4 + $0x8] sm:$0xff]  ;;  %v181_v8 = vmax.f32 %v771_v1, %v180_v4  ;;  %v176_v9 = vsel %vm110_vm1, %v780_v5, -inf  ;;  %v801_v15 = vld [vmem:[#allocation9] sm:$0xff]  ;;  %v806_v17 = vld [vmem:[#allocation4 + $0x10] sm:$0xff]  ;;  %v115_v18 = vsel %vm110_vm1, %v797_v14, -inf  ;;  %528 = vset.pattern.permute.xlu2 %v729_v33 }
  0x17   :  { %88 = vst.msk [vmem:[#allocation2 + $0x10] sm:$0xff] %vm85_vm0, %v728_v0  ;;  %v111_v10 = vsel %vm110_vm1, %v784_v7, -inf  ;;  %v792_v11 = vld [vmem:[#allocation9 + $0x8] sm:$0xff]  ;;  %v177_v12 = vmax.f32 %v775_v3, %v176_v9  ;;  %v116_v20 = vmax.f32 %v806_v17, %v115_v18  ;;  %v814_v22 = vld [vmem:[#allocation9 + $0x18] sm:$0xff]  ;;  %v816_v23 = vld [vmem:[#allocation10] sm:$0xff]  ;;  %vm400_vm5 = vcmask 122880  }
  0x18   :  { %90 = vst.msk [vmem:[#allocation2 + $0x20] sm:$0xff] %vm85_vm0, %v728_v0  ;;  %v112_v13 = vmax.f32 %v782_v6, %v111_v10  ;;  %182 = vmax.xlane.f32.xlu2 %v181_v8  ;;  %v240_v16 = vsel %vm110_vm1, %v792_v11, -inf  ;;  %v812_v21 = vld [vmem:[#allocation10 + $0x8] sm:$0xff]  ;;  %v820_v25 = vld [vmem:[#allocation9 + $0x10] sm:$0xff]  ;;  %v244_v26 = vsel %vm110_vm1, %v814_v22, -inf  ;;  %v826_v29 = vld [vmem:[#allocation10 + $0x18] sm:$0xff] }
  0x19   :  { %91 = vst.msk [vmem:[#allocation2 + $0x28] sm:$0xff] %vm85_vm0, %v728_v0  ;;  %178 = vmax.xlane.f32.xlu1 %v177_v12  ;;  %v241_v19 = vmax.f32 %v801_v15, %v240_v16  ;;  %v304_v24 = vsel %vm110_vm1, %v812_v21, -inf  ;;  %v245_v28 = vmax.f32 %v820_v25, %v244_v26  ;;  %v828_v30 = vld [vmem:[#allocation10 + $0x10] sm:$0xff]  ;;  %v308_v31 = vsel %vm110_vm1, %v826_v29, -inf  ;;  %s731_s2 = smov [#allocation12]   ;;  %s505_s11 = sshll.u32 %s1004_s4, 4  ;;  %s506_s11 = int_to_ptr.hbm [resolvable:$true] %s505_s11 }
  0x1a   :  { %92 = vst.msk [vmem:[#allocation2 + $0x30] sm:$0xff] %vm85_vm0, %v728_v0  ;;  %113 = vmax.xlane.f32.xlu0 %v112_v13  ;;  %v305_v27 = vmax.f32 %v816_v23, %v304_v24  ;;  %v309_v32 = vmax.f32 %v828_v30, %v308_v31  ;;  %s503_s3 = sshll.u32 %s731_s2, 4  ;;  %s504_s3 = int_to_ptr.vmem [resolvable:$true] %s503_s3 }
  0x1b   :  { %93 = vst.msk [vmem:[#allocation2 + $0x38] sm:$0xff] %vm85_vm0, %v728_v0  ;;  %v841_v35 = vld [vmem:[#allocation2 + $0x18] sm:$0xff] }
  0x1c   :  { %95 = vst.msk [vmem:[#allocation3 + $0x8] sm:$0xff] %vm85_vm0, %v730_v34  ;;  %v845_v37 = vld [vmem:[#allocation2] sm:$0xff] }
  0x1d   :  { %94 = vst.msk [vmem:[#allocation3] sm:$0xff] %vm85_vm0, %v730_v34  ;;  %v872_v48 = vld [vmem:[#allocation2 + $0x8] sm:$0xff] }
  0x1e   :  { %96 = vst.msk [vmem:[#allocation3 + $0x10] sm:$0xff] %vm85_vm0, %v730_v34  ;;  %v843_v36 = vld [vmem:[#allocation2 + $0x10] sm:$0xff] }
  0x1f   :  { %97 = vst.msk [vmem:[#allocation3 + $0x18] sm:$0xff] %vm85_vm0, %v730_v34  ;;  %v870_v47 = vld [vmem:[#allocation2 + $0x20] sm:$0xff] }
  0x20   :  { %242 = vmax.xlane.f32.xlu2 %v241_v19  ;;  %98 = vst.msk [vmem:[#allocation3 + $0x20] sm:$0xff] %vm85_vm0, %v730_v34  ;;  %v892_v56 = vld [vmem:[#allocation2 + $0x28] sm:$0xff] }
  0x21   :  { %99 = vst.msk [vmem:[#allocation3 + $0x28] sm:$0xff] %vm85_vm0, %v730_v34  ;;  %v890_v55 = vld [vmem:[#allocation2 + $0x30] sm:$0xff] }
  0x22   :  { %117 = vmax.xlane.f32.xlu0 %v116_v20  ;;  %100 = vst.msk [vmem:[#allocation3 + $0x30] sm:$0xff] %vm85_vm0, %v730_v34  ;;  %v909_v63 = vld [vmem:[#allocation2 + $0x38] sm:$0xff] }
  0x23   :  { %101 = vst.msk [vmem:[#allocation3 + $0x38] sm:$0xff] %vm85_vm0, %v730_v34 }
  0x28   :  { %306 = vmax.xlane.f32.xlu2 %v305_v27 }
  0x2a   :  { %246 = vmax.xlane.f32.xlu0 %v245_v28 }
  0x32   :  { %310 = vmax.xlane.f32.xlu0 %v309_v32 }
  0x8b   :  { %v183_v38 = vpop.xlane.xlu2 %182 }
  0x8c   :  { %v848_v39 = vmax.f32 %v841_v35, %v183_v38  ;;  %v179_v40 = vpop.xlane.xlu1 %178 }
  0x8d   :  { %v114_v41 = vpop.xlane.xlu0 %113  ;;  %v851_v42 = vmax.f32 %v843_v36, %v179_v40 }
  0x8e   :  { %v854_v43 = vmax.f32 %v845_v37, %v114_v41  ;;  %v187_v44 = vsub.f32 %v841_v35, %v848_v39  ;;  %227 = vst.msk [vmem:[#allocation2 + $0x18] sm:$0xff] %vm85_vm0, %v848_v39 }
  0x8f   :  { %v186_v45 = vsub.f32 %v843_v36, %v851_v42  ;;  %226 = vst.msk [vmem:[#allocation2 + $0x10] sm:$0xff] %vm85_vm0, %v851_v42  ;;  %196 = vperm.xlu0 %529, %v851_v42   ;;  %v170_v42 = vld [vmem:[#allocation3 + $0x10] sm:$0xff] }
  0x90   :  { %v121_v46 = vsub.f32 %v845_v37, %v854_v43  ;;  %131 = vperm.xlu1 %527, %v854_v43   ;;  %162 = vst.msk [vmem:[#allocation2] sm:$0xff] %vm85_vm0, %v854_v43 }
  0x93   :  { %v243_v49 = vpop.xlane.xlu2 %242 }
  0x94   :  { %v875_v50 = vmax.f32 %v870_v47, %v243_v49 }
  0x95   :  { %v118_v51 = vpop.xlane.xlu0 %117 }
  0x96   :  { %v878_v52 = vmax.f32 %v872_v48, %v118_v51  ;;  %v250_v53 = vsub.f32 %v870_v47, %v875_v50  ;;  %290 = vst.msk [vmem:[#allocation2 + $0x20] sm:$0xff] %vm85_vm0, %v875_v50 }
  0x98   :  { %v122_v54 = vsub.f32 %v872_v48, %v878_v52  ;;  %163 = vst.msk [vmem:[#allocation2 + $0x8] sm:$0xff] %vm85_vm0, %v878_v52  ;;  %136 = vperm.xlu2 %528, %v878_v52   ;;  %260 = vperm.xlu1 %527, %v875_v50   ;;  %v252_v36 = vmul.f32 1.442695, %v250_v53 }
  0x9b   :  { %v307_v57 = vpop.xlane.xlu2 %306 }
  0x9c   :  { %v895_v59 = vmax.f32 %v890_v55, %v307_v57 }
  0x9d   :  { %v247_v58 = vpop.xlane.xlu0 %246 }
  0x9e   :  { %v898_v60 = vmax.f32 %v892_v56, %v247_v58  ;;  %v314_v61 = vsub.f32 %v890_v55, %v895_v59  ;;  %354 = vst.msk [vmem:[#allocation2 + $0x30] sm:$0xff] %vm85_vm0, %v895_v59 }
  0x9f   :  { %v369_v47 = vld [vmem:[#allocation2 + $0x8] sm:$0xff] }
  0xa0   :  { %v251_v62 = vsub.f32 %v892_v56, %v898_v60  ;;  %291 = vst.msk [vmem:[#allocation2 + $0x28] sm:$0xff] %vm85_vm0, %v898_v60  ;;  %201 = vperm.xlu2 %528, %v848_v39   ;;  %v316_v48 = vmul.f32 1.442695, %v314_v61 }
  0xa5   :  { %v311_v0 = vpop.xlane.xlu0 %310 }
  0xa6   :  { %v912_v4 = vmax.f32 %v909_v63, %v311_v0 }
  0xa8   :  { %v315_v8 = vsub.f32 %v909_v63, %v912_v4  ;;  %355 = vst.msk [vmem:[#allocation2 + $0x38] sm:$0xff] %vm85_vm0, %v912_v4  ;;  %329 = vperm.xlu0 %529, %v912_v4   ;;  %265 = vperm.xlu2 %528, %v898_v60  }
  0xb0   :  { %324 = vperm.xlu2 %528, %v895_v59  }
  0xf2   :  { %v137_v9 = vpop.permute.xlu2 %136 }
  0xf3   :  { %v141_v10 = vsub.f32 %v806_v17, %v137_v9  ;;  %v142_v12 = vsub.f32 %v797_v14, %v137_v9 }
  0xf5   :  { %v147_v13 = vmul.f32 1.442695, %v141_v10  ;;  %v149_v16 = vmul.f32 1.442695, %v142_v12 }
  0xf7   :  { %530 = vpow2.f32 %v147_v13 }
  0xf8   :  { %532 = vpow2.f32 %v149_v16 }
  0xfa   :  { %v202_v18 = vpop.permute.xlu2 %201 }
  0xfb   :  { %v207_v40 = vsub.f32 %v773_v2, %v202_v18  ;;  %v206_v58 = vsub.f32 %v771_v1, %v202_v18 }
  0xfd   :  { %v531_v19 = vpop.eup %530  ;;  %v214_v51 = vmul.f32 1.442695, %v207_v40 }
  0xfe   :  { %v533_v20 = vpop.eup %532 }
  0xff   :  { %v155_v24 = vsel %vm110_vm1, %v533_v20, 0.0 }
 0x100   :  { %v156_v26 = vadd.f32 %v531_v19, %v155_v24  ;;  %v212_v19 = vmul.f32 1.442695, %v206_v58 }
 0x101   :  { %v197_v27 = vpop.permute.xlu0 %196 }
 0x102   :  { %157 = vadd.xlane.f32.xlu1 %v156_v26  ;;  %v266_v28 = vpop.permute.xlu2 %265  ;;  %v204_v31 = vsub.f32 %v775_v3, %v197_v27  ;;  %v205_v32 = vsub.f32 %v780_v5, %v197_v27  ;;  %v132_v17 = vpop.permute.xlu1 %131 }
 0x103   :  { %v139_v14 = vsub.f32 %v782_v6, %v132_v17  ;;  %v140_v33 = vsub.f32 %v784_v7, %v132_v17 }
 0x104   :  { %v208_v34 = vmul.f32 1.442695, %v204_v31  ;;  %v210_v38 = vmul.f32 1.442695, %v205_v32 }
 0x105   :  { %v143_v41 = vmul.f32 1.442695, %v139_v14  ;;  %v145_v49 = vmul.f32 1.442695, %v140_v33 }
 0x106   :  { %534 = vpow2.f32 %v208_v34 }
 0x107   :  { %536 = vpow2.f32 %v210_v38 }
 0x108   :  { %538 = vpow2.f32 %v143_v41 }
 0x109   :  { %540 = vpow2.f32 %v145_v49 }
 0x10a   :  { %v325_v57 = vpop.permute.xlu2 %324  ;;  %v261_v6 = vpop.permute.xlu1 %260  ;;  %542 = vpow2.f32 %v214_v51 }
 0x10b   :  { %v332_v3 = vsub.f32 %v816_v23, %v325_v57  ;;  %v333_v5 = vsub.f32 %v812_v21, %v325_v57  ;;  %v268_v7 = vsub.f32 %v801_v15, %v261_v6  ;;  %v269_v0 = vsub.f32 %v792_v11, %v261_v6 }
 0x10c   :  { %v535_v2 = vpop.eup %534  ;;  %v271_v23 = vsub.f32 %v814_v22, %v266_v28  ;;  %v270_v11 = vsub.f32 %v820_v25, %v266_v28 }
 0x10d   :  { %v336_v9 = vmul.f32 1.442695, %v332_v3  ;;  %v338_v10 = vmul.f32 1.442695, %v333_v5  ;;  %v537_v12 = vpop.eup %536  ;;  %v272_v13 = vmul.f32 1.442695, %v268_v7 }
 0x10e   :  { %v274_v16 = vmul.f32 1.442695, %v269_v0  ;;  %v216_v1 = vsel %vm110_vm1, %v537_v12, 0.0  ;;  %v539_v18 = vpop.eup %538  ;;  %v278_v26 = vmul.f32 1.442695, %v271_v23 }
 0x10f   :  { %544 = vpow2.f32 %v336_v9  ;;  %v217_v21 = vadd.f32 %v535_v2, %v216_v1  ;;  %v541_v15 = vpop.eup %540  ;;  %v276_v22 = vmul.f32 1.442695, %v270_v11  ;;  %v188_v23 = vmul.f32 1.442695, %v186_v45 }
 0x110   :  { %546 = vpow2.f32 %v338_v10  ;;  %v151_v20 = vsel %vm110_vm1, %v541_v15, 0.0  ;;  %v543_v24 = vpop.eup %542  ;;  %v190_v45 = vmul.f32 1.442695, %v187_v44  ;;  %v254_v44 = vmul.f32 1.442695, %v251_v62 }
 0x111   :  { %548 = vpow2.f32 %v272_v13  ;;  %218 = vadd.xlane.f32.xlu0 %v217_v21  ;;  %v152_v27 = vadd.f32 %v539_v18, %v151_v20  ;;  %v220_v40 = vsel %vm110_vm1, %v543_v24, 0.0  ;;  %v105_v13 = vld [vmem:[#allocation3 + $0x8] sm:$0xff]  ;;  %v123_v21 = vmul.f32 1.442695, %v121_v46  ;;  %v104_v18 = vld [vmem:[#allocation3] sm:$0xff]  ;;  %v298_v20 = vld [vmem:[#allocation3 + $0x30] sm:$0xff] }
 0x112   :  { %550 = vpow2.f32 %v274_v16  ;;  %v234_v24 = vld [vmem:[#allocation3 + $0x20] sm:$0xff] }
 0x113   :  { %552 = vpow2.f32 %v212_v19  ;;  %153 = vadd.xlane.f32.xlu2 %v152_v27 }
 0x114   :  { %554 = vpow2.f32 %v278_v26 }
 0x115   :  { %v545_v31 = vpop.eup %544  ;;  %556 = vpow2.f32 %v276_v22 }
 0x116   :  { %v547_v32 = vpop.eup %546 }
 0x117   :  { %v549_v17 = vpop.eup %548  ;;  %v344_v14 = vsel %vm110_vm1, %v547_v32, 0.0  ;;  %v171_v32 = vld [vmem:[#allocation3 + $0x18] sm:$0xff] }
 0x118   :  { %v551_v33 = vpop.eup %550  ;;  %v345_v34 = vadd.f32 %v545_v31, %v344_v14  ;;  %v318_v14 = vmul.f32 1.442695, %v315_v8 }
 0x119   :  { %v553_v38 = vpop.eup %552  ;;  %v280_v25 = vsel %vm110_vm1, %v551_v33, 0.0 }
 0x11a   :  { %346 = vadd.xlane.f32.xlu0 %v345_v34  ;;  %v281_v28 = vadd.f32 %v549_v17, %v280_v25  ;;  %v330_v41 = vpop.permute.xlu0 %329  ;;  %v221_v57 = vadd.f32 %v553_v38, %v220_v40  ;;  %v555_v5 = vpop.eup %554 }
 0x11b   :  { %v334_v49 = vsub.f32 %v828_v30, %v330_v41  ;;  %v335_v51 = vsub.f32 %v826_v29, %v330_v41  ;;  %v557_v6 = vpop.eup %556  ;;  %v284_v7 = vsel %vm110_vm1, %v555_v5, 0.0  ;;  %v125_v29 = vmul.f32 1.442695, %v122_v54 }
 0x11c   :  { %282 = vadd.xlane.f32.xlu1 %v281_v28  ;;  %222 = vadd.xlane.f32.xlu2 %v221_v57  ;;  %v285_v0 = vadd.f32 %v557_v6, %v284_v7  ;;  %v235_v28 = vld [vmem:[#allocation3 + $0x28] sm:$0xff] }
 0x11d   :  { %v340_v58 = vmul.f32 1.442695, %v334_v49  ;;  %v342_v3 = vmul.f32 1.442695, %v335_v51  ;;  %v402_v49 = vld [vmem:[#allocation2 + $0x10] sm:$0xff] }
 0x11f   :  { %558 = vpow2.f32 %v340_v58 }
 0x120   :  { %560 = vpow2.f32 %v342_v3  ;;  %v299_v3 = vld [vmem:[#allocation3 + $0x38] sm:$0xff] }
 0x121   :  { %562 = vpow2.f32 %v125_v29 }
 0x122   :  { %564 = vpow2.f32 %v188_v23 }
 0x123   :  { %566 = vpow2.f32 %v123_v21 }
 0x124   :  { %286 = vadd.xlane.f32.xlu2 %v285_v0 }
 0x125   :  { %v559_v2 = vpop.eup %558 }
 0x126   :  { %v561_v9 = vpop.eup %560 }
 0x127   :  { %v348_v10 = vsel %vm110_vm1, %v561_v9, 0.0  ;;  %v563_v12 = vpop.eup %562  ;;  %v368_v9 = vld [vmem:[#allocation2] sm:$0xff] }
 0x128   :  { %v349_v30 = vadd.f32 %v559_v2, %v348_v10  ;;  %v128_v16 = vmul.f32 %v563_v12, %v105_v13  ;;  %v565_v54 = vpop.eup %564 }
 0x129   :  { %v192_v37 = vmul.f32 %v565_v54, %v170_v42  ;;  %v567_v43 = vpop.eup %566 }
 0x12a   :  { %350 = vadd.xlane.f32.xlu1 %v349_v30  ;;  %v127_v15 = vmul.f32 %v567_v43, %v104_v18 }
 0x175   :  { %v158_v19 = vpop.xlane.xlu1 %157 }
 0x176   :  { %v160_v1 = vadd.f32 %v158_v19, %v128_v16 }
 0x178   :  { %165 = vst.msk [vmem:[#allocation3 + $0x8] sm:$0xff] %vm85_vm0, %v160_v1  ;;  %v466_v1 = vld [vmem:[#allocation2 + $0x30] sm:$0xff] }
 0x17f   :  { %v371_v52 = vld [vmem:[#allocation3 + $0x8] sm:$0xff] }
 0x180   :  { %568 = vlog2.f32 %v371_v52  ;;  %v434_v52 = vld [vmem:[#allocation2 + $0x20] sm:$0xff] }
 0x181   :  { %570 = vpow2.f32 %v316_v48 }
 0x182   :  { %572 = vpow2.f32 %v252_v36 }
 0x183   :  { %574 = vpow2.f32 %v190_v45  ;;  %v403_v45 = vld [vmem:[#allocation2 + $0x18] sm:$0xff] }
 0x184   :  { %v219_v46 = vpop.xlane.xlu0 %218  ;;  %576 = vpow2.f32 %v254_v44 }
 0x185   :  { %v224_v59 = vadd.f32 %v219_v46, %v192_v37 }
 0x186   :  { %v569_v55 = vpop.eup %568  ;;  %v154_v53 = vpop.xlane.xlu2 %153 }
 0x187   :  { %v375_v61 = vmul.f32 0.6931472, %v569_v55  ;;  %228 = vst.msk [vmem:[#allocation3 + $0x10] sm:$0xff] %vm85_vm0, %v224_v59  ;;  %v571_v50 = vpop.eup %570  ;;  %v159_v35 = vadd.f32 %v154_v53, %v127_v15  ;;  %v435_v55 = vld [vmem:[#allocation2 + $0x28] sm:$0xff]  ;;  %v361_v53 = vlaneseq }
 0x188   :  { %v573_v39 = vpop.eup %572  ;;  %v320_v26 = vmul.f32 %v571_v50, %v298_v20 }
 0x189   :  { %v377_v11 = vadd.f32 %v375_v61, %v369_v47  ;;  %164 = vst.msk [vmem:[#allocation3] sm:$0xff] %vm85_vm0, %v159_v35  ;;  %v575_v27 = vpop.eup %574  ;;  %v256_v22 = vmul.f32 %v573_v39, %v234_v24  ;;  %v467_v47 = vld [vmem:[#allocation2 + $0x38] sm:$0xff]  ;;  %v365_v20 = vand.u32 127, %v361_v53 }
 0x18a   :  { %v193_v56 = vmul.f32 %v575_v27, %v171_v32  ;;  %v577_v25 = vpop.eup %576 }
 0x18b   :  { %385 = vperm.xlu0 %529, %v377_v11   ;;  %v257_v41 = vmul.f32 %v577_v25, %v235_v28  ;;  %v362_v11 = vshrl.u32 %v361_v53, 7 }
 0x18d   :  { %v347_v31 = vpop.xlane.xlu0 %346  ;;  %v363_v35 = vadd.s32 8, %v362_v11  ;;  %vm366_vm2 = vcmp.eq.s32.totalorder %v362_v11, %v365_v20 }
 0x18e   :  { %v352_v17 = vadd.f32 %v347_v31, %v320_v26  ;;  %v404_v34 = vld [vmem:[#allocation3 + $0x10] sm:$0xff] }
 0x18f   :  { %v283_v33 = vpop.xlane.xlu1 %282  ;;  %578 = vlog2.f32 %v404_v34  ;;  %v223_v62 = vpop.xlane.xlu2 %222  ;;  %vm367_vm3 = vcmp.eq.s32.totalorder %v363_v35, %v365_v20 }
 0x190   :  { %356 = vst.msk [vmem:[#allocation3 + $0x30] sm:$0xff] %vm85_vm0, %v352_v17  ;;  %v288_v60 = vadd.f32 %v283_v33, %v256_v22  ;;  %v225_v38 = vadd.f32 %v223_v62, %v193_v56  ;;  %580 = vpow2.f32 %v318_v14  ;;  %v370_v40 = vld [vmem:[#allocation3] sm:$0xff] }
 0x191   :  { %582 = vlog2.f32 %v370_v40 }
 0x192   :  { %292 = vst.msk [vmem:[#allocation3 + $0x20] sm:$0xff] %vm85_vm0, %v288_v60 }
 0x193   :  { %229 = vst.msk [vmem:[#allocation3 + $0x18] sm:$0xff] %vm85_vm0, %v225_v38 }
 0x195   :  { %v579_v63 = vpop.eup %578 }
 0x196   :  { %v407_v4 = vmul.f32 0.6931472, %v579_v63  ;;  %v581_v51 = vpop.eup %580 }
 0x197   :  { %v468_v8 = vld [vmem:[#allocation3 + $0x30] sm:$0xff]  ;;  %v287_v57 = vpop.xlane.xlu2 %286  ;;  %v583_v6 = vpop.eup %582  ;;  %v321_v10 = vmul.f32 %v581_v51, %v299_v3 }
 0x198   :  { %584 = vlog2.f32 %v468_v8  ;;  %v410_v58 = vadd.f32 %v407_v4, %v402_v49  ;;  %v289_v7 = vadd.f32 %v287_v57, %v257_v41  ;;  %v373_v0 = vmul.f32 0.6931472, %v583_v6 }
 0x199   :  { %v436_v5 = vld [vmem:[#allocation3 + $0x20] sm:$0xff] }
 0x19a   :  { %586 = vlog2.f32 %v436_v5  ;;  %414 = vperm.xlu1 %527, %v410_v58   ;;  %v405_v2 = vld [vmem:[#allocation3 + $0x18] sm:$0xff]  ;;  %293 = vst.msk [vmem:[#allocation3 + $0x28] sm:$0xff] %vm85_vm0, %v289_v7  ;;  %v376_v30 = vadd.f32 %v373_v0, %v368_v9 }
 0x19b   :  { %588 = vlog2.f32 %v405_v2 }
 0x19c   :  { %380 = vperm.xlu2 %528, %v376_v30  }
 0x19d   :  { %v351_v29 = vpop.xlane.xlu1 %350 }
 0x19e   :  { %v585_v12 = vpop.eup %584  ;;  %v353_v13 = vadd.f32 %v351_v29, %v321_v10 }
 0x19f   :  { %v471_v16 = vmul.f32 0.6931472, %v585_v12 }
 0x1a0   :  { %v587_v19 = vpop.eup %586  ;;  %357 = vst.msk [vmem:[#allocation3 + $0x38] sm:$0xff] %vm85_vm0, %v353_v13 }
 0x1a1   :  { %v474_v23 = vadd.f32 %v471_v16, %v466_v1  ;;  %v439_v21 = vmul.f32 0.6931472, %v587_v19  ;;  %v589_v48 = vpop.eup %588  ;;  %v437_v42 = vld [vmem:[#allocation3 + $0x28] sm:$0xff] }
 0x1a2   :  { %v409_v54 = vmul.f32 0.6931472, %v589_v48  ;;  %590 = vlog2.f32 %v437_v42 }
 0x1a3   :  { %478 = vperm.xlu1 %527, %v474_v23   ;;  %v442_v36 = vadd.f32 %v439_v21, %v434_v52 }
 0x1a4   :  { %v411_v37 = vadd.f32 %v409_v54, %v403_v45 }
 0x1a5   :  { %446 = vperm.xlu2 %528, %v442_v36  }
 0x1a6   :  { %419 = vperm.xlu0 %529, %v411_v37  }
 0x1a7   :  { %v469_v43 = vld [vmem:[#allocation3 + $0x38] sm:$0xff] }
 0x1a8   :  { %592 = vlog2.f32 %v469_v43  ;;  %v591_v46 = vpop.eup %590 }
 0x1a9   :  { %v441_v18 = vmul.f32 0.6931472, %v591_v46 }
 0x1ab   :  { %v443_v59 = vadd.f32 %v441_v18, %v435_v55 }
 0x1ae   :  { %v593_v61 = vpop.eup %592  ;;  %451 = vperm.xlu0 %529, %v443_v59  }
 0x1af   :  { %v473_v15 = vmul.f32 0.6931472, %v593_v61 }
 0x1b1   :  { %v475_v50 = vadd.f32 %v473_v15, %v467_v47 }
 0x1b3   :  { %483 = vperm.xlu2 %528, %v475_v50  }
 0x1f6   :  { %v381_v39 = vpop.permute.xlu2 %380 }
 0x1f7   :  { %v388_v44 = vsel %vm366_vm2, %v381_v39, 0.0 }
 0x1f8   :  { %v391_v27 = vsel %vm390_vm4, %v388_v44, 0.0 }
 0x1fd   :  { %v386_v24 = vpop.permute.xlu0 %385 }
 0x1fe   :  { %v389_v26 = vsel %vm367_vm3, %v386_v24, 0.0 }
 0x1ff   :  { %v392_v31 = vsel %vm390_vm4, %v389_v26, 0.0  ;;  %v447_v34 = vpop.permute.xlu2 %446 }
 0x200   :  { %v393_v32 = vadd.f32 %v392_v31, %v391_v27  ;;  %v454_v2 = vsel %vm366_vm2, %v447_v34, 0.0 }
 0x201   :  { %v456_v16 = vsel %vm390_vm4, %v454_v2, 0.0 }
 0x202   :  { %v394_v17 = vrot.slane %v393_v32, 4 }
 0x204   :  { %v395_v22 = vadd.f32 %v394_v17, %v393_v32 }
 0x206   :  { %v396_v14 = vrot.slane %v395_v22, 2 }
 0x208   :  { %v397_v33 = vadd.f32 %v396_v14, %v395_v22 }
 0x20a   :  { %v398_v56 = vrot.slane %v397_v33, 1 }
 0x20c   :  { %v399_v60 = vadd.f32 %v398_v56, %v397_v33  ;;  %v415_v62 = vpop.permute.xlu1 %414 }
 0x20d   :  { %v484_v38 = vpop.permute.xlu2 %483  ;;  %v422_v8 = vsel %vm366_vm2, %v415_v62, 0.0 }
 0x20e   :  { %401 = vst.msk [vmem:[#allocation12] sm:$0x1] %vm400_vm5, %v399_v60  ;;  %v487_v40 = vsel %vm367_vm3, %v484_v38, 0.0  ;;  %v424_v58 = vsel %vm390_vm4, %v422_v8, 0.0 }
 0x20f   :  { %v489_v63 = vsel %vm390_vm4, %v487_v40, 0.0 }
 0x215   :  { %v479_v25 = vpop.permute.xlu1 %478 }
 0x216   :  { %v486_v28 = vsel %vm366_vm2, %v479_v25, 0.0 }
 0x217   :  { %v488_v4 = vsel %vm390_vm4, %v486_v28, 0.0 }
 0x218   :  { %v490_v41 = vadd.f32 %v489_v63, %v488_v4  ;;  %v420_v49 = vpop.permute.xlu0 %419 }
 0x219   :  { %v423_v51 = vsel %vm367_vm3, %v420_v49, 0.0 }
 0x21a   :  { %v491_v57 = vrot.slane %v490_v41, 4  ;;  %v425_v3 = vsel %vm390_vm4, %v423_v51, 0.0 }
 0x21b   :  { %v426_v5 = vadd.f32 %v425_v3, %v424_v58 }
 0x21c   :  { %v492_v6 = vadd.f32 %v491_v57, %v490_v41 }
 0x21d   :  { %v427_v7 = vrot.slane %v426_v5, 4 }
 0x21e   :  { %v493_v0 = vrot.slane %v492_v6, 2 }
 0x21f   :  { %v428_v9 = vadd.f32 %v427_v7, %v426_v5 }
 0x220   :  { %v494_v10 = vadd.f32 %v493_v0, %v492_v6  ;;  %v452_v30 = vpop.permute.xlu0 %451 }
 0x221   :  { %v429_v29 = vrot.slane %v428_v9, 2  ;;  %v455_v13 = vsel %vm367_vm3, %v452_v30, 0.0 }
 0x222   :  { %v495_v12 = vrot.slane %v494_v10, 1  ;;  %v457_v19 = vsel %vm390_vm4, %v455_v13, 0.0 }
 0x223   :  { %v430_v1 = vadd.f32 %v429_v29, %v428_v9  ;;  %v458_v21 = vadd.f32 %v457_v19, %v456_v16 }
 0x224   :  { %v496_v23 = vadd.f32 %v495_v12, %v494_v10 }
 0x225   :  { %v431_v48 = vrot.slane %v430_v1, 1  ;;  %v459_v52 = vrot.slane %v458_v21, 4 }
 0x226   :  { %497 = vst.msk [vmem:[#allocation12 + $0x3] sm:$0x1] %vm400_vm5, %v496_v23 }
 0x227   :  { %v432_v54 = vadd.f32 %v431_v48, %v430_v1  ;;  %v460_v36 = vadd.f32 %v459_v52, %v458_v21 }
 0x229   :  { %v461_v42 = vrot.slane %v460_v36, 2  ;;  %433 = vst.msk [vmem:[#allocation12 + $0x1] sm:$0x1] %vm400_vm5, %v432_v54 }
 0x22b   :  { %v462_v45 = vadd.f32 %v461_v42, %v460_v36 }
 0x22d   :  { %v463_v37 = vrot.slane %v462_v45, 1 }
 0x22f   :  { %v464_v43 = vadd.f32 %v463_v37, %v462_v45 }
 0x231   :  { %465 = vst.msk [vmem:[#allocation12 + $0x2] sm:$0x1] %vm400_vm5, %v464_v43 }
 0x232   :  { %508 = dma.vmem_to_hbm [thread:$0]  %s504_s3, 64, %s506_s11, [#allocation6]  }
 0x233   :  { %720 = dma.done.wait [#allocation6], 64  }
 0x234   :  { %721 = vsyncadd [#allocation6], 4294967232 }
 0x235   :  { %513 = vsyncpa [#allocation5], 1 }
 0x236   :  { %514 = vsyncpa [#allocation8], 1 }
 0x237   :  { %515 = vsyncpa [#allocation11], 1 }
 0x238   :  { %516 = vsyncpa [#allocation6], 1 }

</bundles_post_ra>
